<compile_context>
chip_gen: v7x
topology: tpu7x:2x2x1
jax: 0.10.0
libtpu: 0.0.40
codegen_flags: <defaults>
</compile_context>

<pallas_src>
import jax
import jax.numpy as jnp
from jax.experimental import pallas as pl
from jax.experimental.pallas import tpu as pltpu


def _snorm_kernel(x_ref, gamma_ref, beta_ref, o_ref):
    # x_ref block: (R, N, T) -- full reduction axis N resident in VMEM,
    #              T on lanes, N on sublanes (XLU handles the cross-sublane reduce).
    # gamma_ref / beta_ref blocks: (R, 1, 1) per-row scale / shift.
    x = x_ref[...].astype(jnp.float32)
    n = x.shape[1]

    mean = jnp.mean(x, axis=1, keepdims=True)               # (R, 1, T)
    diff = x - mean
    if n > 1:
        # unbiased variance (divide by N-1), matching torch.var(unbiased=True)
        var = jnp.sum(diff * diff, axis=1, keepdims=True) * (1.0 / (n - 1))
    else:
        # torch.var(unbiased=True) over a single sample is NaN
        var = jnp.full_like(mean, jnp.nan)

    inv_std = jax.lax.rsqrt(var + 1e-5)                      # EUP slot (cheap)
    # Fold gamma into inv_std once per (row, t): one fewer full-block multiply.
    scale = inv_std * gamma_ref[...].astype(jnp.float32)     # (R, 1, T)
    shift = beta_ref[...].astype(jnp.float32)                # (R, 1, 1)

    o_ref[...] = (diff * scale + shift).astype(o_ref.dtype)


def _round_up(a, m):
    return -(-a // m) * m


def snorm(x, gamma, beta):
    """x: (B, C, N, T); gamma, beta: (C,). Returns (B, C, N, T)."""
    B, C, N, T = x.shape
    BC = B * C

    # Native layout, zero-copy views: (B, C, N, T) -> (B*C, N, T).
    x3 = x.reshape(BC, N, T)
    # Per-(b, c)-row params (tiny: B*C elements); row r = b*C + c has channel r % C.
    g3 = jnp.tile(gamma, B).reshape(BC, 1, 1)
    b3 = jnp.tile(beta, B).reshape(BC, 1, 1)

    # ---- per-generation VMEM budgeting -------------------------------------
    try:
        vmem_cap = int(pltpu.get_tpu_info().vmem_capacity_bytes)
    except Exception:
        vmem_cap = 64 * 1024 * 1024  # conservative fallback (v7x per-core VMEM)
    # Raise v5e's 16 MiB scoped default; stay at half of physical VMEM elsewhere
    # (v5e/v6e -> 64 MiB, v7x -> 32 MiB).
    vmem_limit = min(vmem_cap // 2, 64 * 1024 * 1024)

    item = jnp.dtype(x.dtype).itemsize
    sub = {4: 8, 2: 16, 1: 32}.get(item, 8)       # sublane packing multiple
    lane = 128
    # Padded VMEM bytes per (N, T) row of a block:
    row_io = _round_up(N, sub) * _round_up(T, lane) * item     # x-in / out tiles
    row_f32 = _round_up(N, 8) * _round_up(T, lane) * 4         # in-kernel f32 temps
    row_par = 8 * lane * 4                                      # gamma/beta (1,1) tiles
    # 2x double buffers each for x-in and out, ~3 block-sized f32 temporaries
    # (x_f32, diff, result), 2x double buffers each for gamma/beta.
    per_row = 2 * row_io + 2 * row_io + 3 * row_f32 + 4 * row_par
    budget = int(vmem_limit * 0.75)
    r_blk = max(1, min(BC, budget // per_row))
    # TODO(synk): if even a single (1, N, T) row blows the budget (very large N),
    # split N over a trailing "arbitrary" grid axis with sum/sumsq accumulators
    # in VMEM scratch instead of keeping the whole reduction axis resident.

    grid = (pl.cdiv(BC, r_blk),)  # single flat parallel axis -> both v7x TCs busy

    grid_spec = pltpu.PrefetchScalarGridSpec(
        num_scalar_prefetch=0,
        grid=grid,
        in_specs=[
            pl.BlockSpec((r_blk, N, T), lambda i: (i, 0, 0)),   # x
            pl.BlockSpec((r_blk, 1, 1), lambda i: (i, 0, 0)),   # gamma
            pl.BlockSpec((r_blk, 1, 1), lambda i: (i, 0, 0)),   # beta
        ],
        out_specs=pl.BlockSpec((r_blk, N, T), lambda i: (i, 0, 0)),
    )

    out3 = pl.pallas_call(
        _snorm_kernel,
        out_shape=jax.ShapeDtypeStruct((BC, N, T), x.dtype),
        grid_spec=grid_spec,
        compiler_params=pltpu.CompilerParams(
            dimension_semantics=("parallel",),
            vmem_limit_bytes=vmem_limit,
        ),
    )(x3, g3, b3)

    # TODO(synk): when T < 128 the lane axis is only partially used; if profiling
    # ever shows this VPU-bound, densify lanes in-VMEM (pltpu.einshape) rather
    # than re-introducing HBM transposes.
    return out3.reshape(B, C, N, T)


def snorm_ref(x, gamma, beta):
    mean = jnp.mean(x, axis=2, keepdims=True)
    var = jnp.var(x, axis=2, keepdims=True, ddof=1)  # unbiased
    x_norm = (x - mean) / jnp.sqrt(var + 1e-5)
    return x_norm * gamma.reshape(1, -1, 1, 1) + beta.reshape(1, -1, 1, 1)


if __name__ == "__main__":
    key = jax.random.PRNGKey(0)
    B, C, N, T = 2, 4, 16, 16
    kx, kg, kb = jax.random.split(key, 3)
    x = jax.random.normal(kx, (B, C, N, T), dtype=jnp.float32)

    # Default nn.Parameter init (zeros / ones)
    beta = jnp.zeros((C,), dtype=jnp.float32)
    gamma = jnp.ones((C,), dtype=jnp.float32)

    out = jax.block_until_ready(snorm(x, gamma, beta))
    ref = snorm_ref(x, gamma, beta)
    assert out.shape == (B, C, N, T)
    assert jnp.allclose(out, ref, atol=1e-5, rtol=1e-5)

    # Non-trivial gamma/beta to exercise the per-channel broadcast path.
    gamma2 = 1.0 + 0.1 * jax.random.normal(kg, (C,), dtype=jnp.float32)
    beta2 = 0.1 * jax.random.normal(kb, (C,), dtype=jnp.float32)
    out2 = jax.block_until_ready(snorm(x, gamma2, beta2))
    ref2 = snorm_ref(x, gamma2, beta2)
    assert jnp.allclose(out2, ref2, atol=1e-5, rtol=1e-5)

    print("KERNEL_OK")
</pallas_src>

<mosaic_0001>
module attributes {stable_mosaic.version = 11 : i64} {
  func.func @_snorm_kernel(%arg0: i32, %arg1: memref<8x16x16xf32, #tpu.memory_space<vmem>>, %arg2: memref<8x1x1xf32, #tpu.memory_space<vmem>>, %arg3: memref<8x1x1xf32, #tpu.memory_space<vmem>>, %arg4: memref<8x16x16xf32, #tpu.memory_space<vmem>>) attributes {dimension_semantics = [#tpu.dimension_semantics<parallel>], iteration_bounds = array<i64: 1>, scalar_prefetch = 0 : i64, scratch_operands = 0 : i64, tpu.core_type = #tpu.core_type<tc>, window_params = [{transform_indices = @transform_0, window_bounds = array<i64: 8, 16, 16>}, {transform_indices = @transform_1, window_bounds = array<i64: 8, 1, 1>}, {transform_indices = @transform_2, window_bounds = array<i64: 8, 1, 1>}, {transform_indices = @transform_3, window_bounds = array<i64: 8, 16, 16>}]} {
    %c0 = arith.constant 0 : index
    %c0_0 = arith.constant 0 : index
    %c0_1 = arith.constant 0 : index
    %0 = vector.load %arg1[%c0, %c0_0, %c0_1] : memref<8x16x16xf32, #tpu.memory_space<vmem>>, vector<8x16x16xf32>
    %cst = arith.constant dense<0.000000e+00> : vector<8x16xf32>
    %1 = vector.multi_reduction <add>, %0, %cst [1] : vector<8x16x16xf32> to vector<8x16xf32>
    %2 = vector.shape_cast %1 : vector<8x16xf32> to vector<8x1x16xf32>
    %cst_2 = arith.constant 1.600000e+01 : f32
    %3 = vector.broadcast %cst_2 : f32 to vector<8x1x16xf32>
    %4 = arith.divf %2, %3 : vector<8x1x16xf32>
    %5 = vector.broadcast %4 : vector<8x1x16xf32> to vector<8x16x16xf32>
    %6 = arith.subf %0, %5 : vector<8x16x16xf32>
    %7 = arith.mulf %6, %6 : vector<8x16x16xf32>
    %cst_3 = arith.constant dense<0.000000e+00> : vector<8x16xf32>
    %8 = vector.multi_reduction <add>, %7, %cst_3 [1] : vector<8x16x16xf32> to vector<8x16xf32>
    %9 = vector.shape_cast %8 : vector<8x16xf32> to vector<8x1x16xf32>
    %cst_4 = arith.constant 0.0666666701 : f32
    %10 = vector.broadcast %cst_4 : f32 to vector<8x1x16xf32>
    %11 = arith.mulf %9, %10 : vector<8x1x16xf32>
    %cst_5 = arith.constant 9.99999974E-6 : f32
    %12 = vector.broadcast %cst_5 : f32 to vector<8x1x16xf32>
    %13 = arith.addf %11, %12 : vector<8x1x16xf32>
    %14 = math.rsqrt %13 : vector<8x1x16xf32>
    %c0_6 = arith.constant 0 : index
    %c0_7 = arith.constant 0 : index
    %c0_8 = arith.constant 0 : index
    %15 = vector.load %arg2[%c0_6, %c0_7, %c0_8] : memref<8x1x1xf32, #tpu.memory_space<vmem>>, vector<8x1x1xf32>
    %16 = vector.broadcast %15 : vector<8x1x1xf32> to vector<8x1x16xf32>
    %17 = arith.mulf %14, %16 : vector<8x1x16xf32>
    %c0_9 = arith.constant 0 : index
    %c0_10 = arith.constant 0 : index
    %c0_11 = arith.constant 0 : index
    %18 = vector.load %arg3[%c0_9, %c0_10, %c0_11] : memref<8x1x1xf32, #tpu.memory_space<vmem>>, vector<8x1x1xf32>
    %19 = vector.broadcast %17 : vector<8x1x16xf32> to vector<8x16x16xf32>
    %20 = arith.mulf %6, %19 : vector<8x16x16xf32>
    %21 = vector.broadcast %18 : vector<8x1x1xf32> to vector<8x16x16xf32>
    %22 = arith.addf %20, %21 : vector<8x16x16xf32>
    %c0_12 = arith.constant 0 : index
    %c0_13 = arith.constant 0 : index
    %c0_14 = arith.constant 0 : index
    %23 = vector.load %arg4[%c0_12, %c0_13, %c0_14] : memref<8x16x16xf32, #tpu.memory_space<vmem>>, vector<8x16x16xf32>
    tpu.vector_store %arg4[%c0_12, %c0_13, %c0_14], %22 {strides = array<i32>} : memref<8x16x16xf32, #tpu.memory_space<vmem>>, vector<8x16x16xf32>,
    return
  }
  func.func @transform_0(%arg0: i32) -> (i32, i32, i32) {
    %c0_i32 = arith.constant 0 : i32
    %c0_i32_0 = arith.constant 0 : i32
    %c0_i32_1 = arith.constant 0 : i32
    return %arg0, %c0_i32, %c0_i32_0 : i32, i32, i32
  }
  func.func @transform_1(%arg0: i32) -> (i32, i32, i32) {
    %c0_i32 = arith.constant 0 : i32
    %c0_i32_0 = arith.constant 0 : i32
    %c0_i32_1 = arith.constant 0 : i32
    return %arg0, %c0_i32, %c0_i32_0 : i32, i32, i32
  }
  func.func @transform_2(%arg0: i32) -> (i32, i32, i32) {
    %c0_i32 = arith.constant 0 : i32
    %c0_i32_0 = arith.constant 0 : i32
    %c0_i32_1 = arith.constant 0 : i32
    return %arg0, %c0_i32, %c0_i32_0 : i32, i32, i32
  }
  func.func @transform_3(%arg0: i32) -> (i32, i32, i32) {
    %c0_i32 = arith.constant 0 : i32
    %c0_i32_0 = arith.constant 0 : i32
    %c0_i32_1 = arith.constant 0 : i32
    return %arg0, %c0_i32, %c0_i32_0 : i32, i32, i32
  }
}

</mosaic_0001>

<bundles_post_ra>
// kernel: tpu_custom_call.1
= control target key start
LH: loop header
LB: loop body
LE: loop exit
PB: predicated region body
PF: predicated region fallthrough
CT: control target
= control target key end

     0   :  { %8 = vsyncpa [#allocation3], 0  ;;  %s872_s0 = inlined_call_operand.hbm [shape: f32[8,16,16], index: 0, kind: input, shape index: {}]   ;;  %s873_s1 = inlined_call_operand.vmem [shape: f32[8,1,1], index: 1, kind: input, shape index: {}]   ;;  %s874_s2 = inlined_call_operand.vmem [shape: f32[8,1,1], index: 2, kind: input, shape index: {}]   ;;  %s875_s3 = inlined_call_operand.hbm [shape: f32[8,16,16], index: 3, kind: output, shape index: {}]  }
   0x1   :  { %9 = vsyncpa [#allocation4], 0  ;;  %s567_s12 = smov [#allocation2]   ;;  %s519_s16 = scalar_lea.hbm %s872_s0, 2048 }
   0x2   :  { %s15_s13 = sshll.u32 %s567_s12, 4  ;;  %p520_p0 = scmp.ne.s32.totalorder %s872_s0, %s519_s16  ;;  %s16_s13 = int_to_ptr.vmem [resolvable:$true] %s15_s13 }
   0x3   :  { %p523_p1 = scmp.lt.u32.totalorder %s519_s16, %s872_s0 }
   0x5   :  { %p525_p2 = pnand %p523_p1, %p520_p0 }
   0x7   :  { %528 = shalt.err (!%p525_p2)
}
   0x8   :  { %s529_s21 = scalar_lea.vmem %s16_s13, 2048  ;;  %p534_p4 = scmp.lt.s32.totalorder %s16_s13, %s16_s13 }
   0x9   :  { %p530_p3 = scmp.ne.s32.totalorder %s16_s13, %s529_s21  ;;  %p535_p5 = scmp.lt.s32.totalorder %s529_s21, %s529_s21 }
   0xb   :  { %p536_p6 = por %p535_p5, %p534_p4 }
   0xd   :  { %p537_p7 = pnand %p536_p6, %p530_p3 }
   0xf   :  { %540 = shalt.err (!%p537_p7)
}
  0x10   :  { %s568_s22 = smov 128   ;;  %s569_s23 = smov 8  }
  0x11   :  { %21 = dma.hbm_to_vmem [thread:$0]  %s872_s0, 2048, %s16_s13, [#allocation3], %s568_s22, %s568_s22, %s569_s23  }
  0x12   :  { %563 = dma.done.wait [#allocation3], 2048  }
  0x13   :  { %564 = vsyncadd [#allocation3], 4294965248  ;;  %v570_v0 = vmov 0   ;;  %v257_v1 = vld [vmem:[%s873_s1 + $0x2] sm:$0x1]  ;;  %vm45_vm0 = vcmask 130048  }
  0x14   :  { %502 = vset.pattern.permute.xlu1 %v570_v0  ;;  %501 = vset.pattern.permute.xlu0 %v570_v0  ;;  %v255_v2 = vld [vmem:[%s873_s1] sm:$0x1]  ;;  %v258_v3 = vld [vmem:[%s873_s1 + $0x3] sm:$0x1]  ;;  %v256_v4 = vld [vmem:[%s873_s1 + $0x1] sm:$0x1] }
  0x15   :  { %283 = vperm.xlu1 %502, %v257_v1   ;;  %265 = vperm.xlu0 %501, %v255_v2   ;;  %v260_v5 = vld [vmem:[%s873_s1 + $0x5] sm:$0x1]  ;;  %v259_v6 = vld [vmem:[%s873_s1 + $0x4] sm:$0x1]  ;;  %v262_v7 = vld [vmem:[%s873_s1 + $0x7] sm:$0x1] }
  0x16   :  { %v261_v8 = vld [vmem:[%s873_s1 + $0x6] sm:$0x1]  ;;  %v489_v9 = vld [vmem:[%s874_s2 + $0x1] ss:$0 sm:$0xff]  ;;  %v488_v10 = vld [vmem:[%s874_s2] ss:$0 sm:$0xff] }
  0x17   :  { %v491_v11 = vld [vmem:[%s874_s2 + $0x3] ss:$0 sm:$0xff]  ;;  %v490_v12 = vld [vmem:[%s874_s2 + $0x2] ss:$0 sm:$0xff]  ;;  %v493_v13 = vld [vmem:[%s874_s2 + $0x5] ss:$0 sm:$0xff] }
  0x18   :  { %v492_v14 = vld [vmem:[%s874_s2 + $0x4] ss:$0 sm:$0xff]  ;;  %v495_v15 = vld [vmem:[%s874_s2 + $0x7] ss:$0 sm:$0xff]  ;;  %v494_v16 = vld [vmem:[%s874_s2 + $0x6] ss:$0 sm:$0xff] }
  0x19   :  { %292 = vperm.xlu1 %502, %v258_v3   ;;  %274 = vperm.xlu0 %501, %v256_v4   ;;  %v655_v17 = vld [vmem:[#allocation2] sm:$0xff]  ;;  %v657_v18 = vld [vmem:[#allocation2 + $0x8] sm:$0xff]  ;;  %v659_v19 = vld [vmem:[#allocation2 + $0x10] sm:$0xff]  ;;  %s571_s2 = smov [#allocation5]  }
  0x1a   :  { %v661_v20 = vld [vmem:[#allocation2 + $0x18] sm:$0xff]  ;;  %v663_v21 = vld [vmem:[#allocation2 + $0x20] sm:$0xff]  ;;  %v665_v22 = vld [vmem:[#allocation2 + $0x28] sm:$0xff]  ;;  %v46_v23 = vsel %vm45_vm0, %v655_v17, 0.0  ;;  %v47_v24 = vsel %vm45_vm0, %v657_v18, 0.0  ;;  %v55_v27 = vsel %vm45_vm0, %v659_v19, 0.0 }
  0x1b   :  { %v671_v25 = vld [vmem:[#allocation2 + $0x30] sm:$0xff]  ;;  %v673_v26 = vld [vmem:[#allocation2 + $0x38] sm:$0xff]  ;;  %v56_v28 = vsel %vm45_vm0, %v661_v20, 0.0  ;;  %v64_v29 = vsel %vm45_vm0, %v663_v21, 0.0  ;;  %v65_v30 = vsel %vm45_vm0, %v665_v22, 0.0  ;;  %v48_v31 = vadd.f32 %v47_v24, %v46_v23  ;;  %v691_v41 = vld [vmem:[#allocation2 + $0x40] sm:$0xff] }
  0x1c   :  { %v73_v32 = vsel %vm45_vm0, %v671_v25, 0.0  ;;  %v74_v33 = vsel %vm45_vm0, %v673_v26, 0.0  ;;  %v57_v34 = vadd.f32 %v56_v28, %v55_v27  ;;  %v66_v35 = vadd.f32 %v65_v30, %v64_v29  ;;  %v687_v37 = vld [vmem:[#allocation2 + $0x50] sm:$0xff]  ;;  %v689_v38 = vld [vmem:[#allocation2 + $0x58] sm:$0xff]  ;;  %v693_v42 = vld [vmem:[#allocation2 + $0x48] sm:$0xff]  ;;  %s476_s4 = sshll.u32 %s571_s2, 4  ;;  %s477_s4 = int_to_ptr.vmem [resolvable:$true] %s476_s4 }
  0x1d   :  { %310 = vperm.xlu1 %502, %v260_v5   ;;  %301 = vperm.xlu0 %501, %v259_v6   ;;  %v75_v36 = vadd.f32 %v74_v33, %v73_v32  ;;  %v49_v39 = vrot.slane %v48_v31, 4  ;;  %v91_v43 = vsel %vm45_vm0, %v687_v37, 0.0  ;;  %v92_v44 = vsel %vm45_vm0, %v689_v38, 0.0  ;;  %v703_v49 = vld [vmem:[#allocation2 + $0x70] sm:$0xff]  ;;  %v705_v50 = vld [vmem:[#allocation2 + $0x78] sm:$0xff]  ;;  %v707_v53 = vld [vmem:[#allocation2 + $0x60] sm:$0xff]  ;;  %p546_p9 = scmp.lt.s32.totalorder %s477_s4, %s477_s4 }
  0x1e   :  { %v58_v40 = vrot.slane %v57_v34, 4  ;;  %v67_v45 = vrot.slane %v66_v35, 4  ;;  %v82_v47 = vsel %vm45_vm0, %v691_v41, 0.0  ;;  %v83_v48 = vsel %vm45_vm0, %v693_v42, 0.0  ;;  %v709_v54 = vld [vmem:[#allocation2 + $0x68] sm:$0xff]  ;;  %s541_s0 = scalar_lea.vmem %s477_s4, 2048 }
  0x1f   :  { %v76_v46 = vrot.slane %v75_v36, 4  ;;  %v50_v51 = vadd.f32 %v49_v39, %v48_v31  ;;  %v93_v55 = vadd.f32 %v92_v44, %v91_v43  ;;  %v84_v56 = vadd.f32 %v83_v48, %v82_v47  ;;  %p542_p8 = scmp.ne.s32.totalorder %s477_s4, %s541_s0  ;;  %p547_p10 = scmp.lt.s32.totalorder %s541_s0, %s541_s0 }
  0x20   :  { %v59_v52 = vadd.f32 %v58_v40, %v57_v34  ;;  %v109_v57 = vsel %vm45_vm0, %v703_v49, 0.0  ;;  %v110_v58 = vsel %vm45_vm0, %v705_v50, 0.0  ;;  %v68_v59 = vadd.f32 %v67_v45, %v66_v35 }
  0x21   :  { %328 = vperm.xlu1 %502, %v262_v7   ;;  %319 = vperm.xlu0 %501, %v261_v8   ;;  %v77_v60 = vadd.f32 %v76_v46, %v75_v36  ;;  %v100_v61 = vsel %vm45_vm0, %v707_v53, 0.0  ;;  %v101_v62 = vsel %vm45_vm0, %v709_v54, 0.0  ;;  %v51_v63 = vrot.slane %v50_v51, 2  ;;  %p548_p11 = por %p547_p10, %p546_p9 }
  0x22   :  { %v60_v0 = vrot.slane %v59_v52, 2  ;;  %v94_v1 = vrot.slane %v93_v55, 4  ;;  %v111_v2 = vadd.f32 %v110_v58, %v109_v57  ;;  %v85_v3 = vrot.slane %v84_v56, 4 }
  0x23   :  { %v102_v4 = vadd.f32 %v101_v62, %v100_v61  ;;  %v69_v5 = vrot.slane %v68_v59, 2  ;;  %v78_v6 = vrot.slane %v77_v60, 2  ;;  %v52_v7 = vadd.f32 %v51_v63, %v50_v51  ;;  %p549_p12 = pnand %p548_p11, %p542_p8 }
  0x24   :  { %v61_v8 = vadd.f32 %v60_v0, %v59_v52 }
  0x25   :  { %412 = vperm.xlu1 %502, %v489_v9   ;;  %408 = vperm.xlu0 %501, %v488_v10   ;;  %v95_v9 = vadd.f32 %v94_v1, %v93_v55  ;;  %v112_v10 = vrot.slane %v111_v2, 4 }
  0x27   :  { %v96_v23 = vrot.slane %v95_v9, 2  ;;  %v113_v24 = vadd.f32 %v112_v10, %v111_v2 }
  0x29   :  { %420 = vperm.xlu1 %502, %v491_v11   ;;  %416 = vperm.xlu0 %501, %v490_v12   ;;  %v86_v11 = vadd.f32 %v85_v3, %v84_v56  ;;  %v103_v12 = vrot.slane %v102_v4, 4  ;;  %v97_v33 = vadd.f32 %v96_v23, %v95_v9  ;;  %v114_v34 = vrot.slane %v113_v24, 2 }
  0x2b   :  { %v87_v27 = vrot.slane %v86_v11, 2  ;;  %v104_v28 = vadd.f32 %v103_v12, %v102_v4  ;;  %v98_v45 = vrot.slane %v97_v33, 1  ;;  %v115_v46 = vadd.f32 %v114_v34, %v113_v24 }
  0x2d   :  { %428 = vperm.xlu1 %502, %v493_v13   ;;  %424 = vperm.xlu0 %501, %v492_v14   ;;  %v70_v13 = vadd.f32 %v69_v5, %v68_v59  ;;  %v79_v14 = vadd.f32 %v78_v6, %v77_v60  ;;  %v88_v35 = vadd.f32 %v87_v27, %v86_v11  ;;  %v105_v36 = vrot.slane %v104_v28, 2 }
  0x2e   :  { %v99_v59 = vadd.f32 %v98_v45, %v97_v33  ;;  %v116_v60 = vrot.slane %v115_v46, 1 }
  0x2f   :  { %v71_v29 = vrot.slane %v70_v13, 1  ;;  %v80_v30 = vrot.slane %v79_v14, 1  ;;  %v89_v47 = vrot.slane %v88_v35, 1  ;;  %v106_v48 = vadd.f32 %v105_v36, %v104_v28 }
  0x30   :  { %v117_v2 = vadd.f32 %v116_v60, %v115_v46 }
  0x31   :  { %436 = vperm.xlu1 %502, %v495_v15   ;;  %432 = vperm.xlu0 %501, %v494_v16   ;;  %v53_v15 = vrot.slane %v52_v7, 1  ;;  %v62_v16 = vrot.slane %v61_v8, 1  ;;  %v72_v39 = vadd.f32 %v71_v29, %v70_v13  ;;  %v81_v40 = vadd.f32 %v80_v30, %v79_v14 }
  0x32   :  { %v90_v61 = vadd.f32 %v89_v47, %v88_v35  ;;  %v107_v62 = vrot.slane %v106_v48, 1  ;;  %v126_v13 = vmul.f32 0.0625, %v117_v2 }
  0x33   :  { %v54_v31 = vadd.f32 %v53_v15, %v52_v7  ;;  %v63_v32 = vadd.f32 %v62_v16, %v61_v8  ;;  %v121_v51 = vmul.f32 0.0625, %v72_v39  ;;  %v122_v52 = vmul.f32 0.0625, %v81_v40 }
  0x34   :  { %v123_v3 = vmul.f32 0.0625, %v90_v61  ;;  %v787_v30 = vsub.f32 %v705_v50, %v126_v13 }
  0x35   :  { %v119_v43 = vmul.f32 0.0625, %v54_v31  ;;  %v120_v44 = vmul.f32 0.0625, %v63_v32  ;;  %v732_v63 = vsub.f32 %v663_v21, %v121_v51  ;;  %v735_v0 = vsub.f32 %v665_v22, %v121_v51 }
  0x36   :  { %v124_v22 = vmul.f32 0.0625, %v99_v59  ;;  %v770_v14 = vsub.f32 %v691_v41, %v123_v3  ;;  %v773_v15 = vsub.f32 %v693_v42, %v123_v3  ;;  %v784_v42 = vsub.f32 %v703_v49, %v126_v13 }
  0x37   :  { %v720_v55 = vsub.f32 %v655_v17, %v119_v43  ;;  %v723_v56 = vsub.f32 %v657_v18, %v119_v43  ;;  %v726_v57 = vsub.f32 %v659_v19, %v120_v44  ;;  %v729_v58 = vsub.f32 %v661_v20, %v120_v44 }
  0x38   :  { %v738_v17 = vsub.f32 %v671_v25, %v122_v52  ;;  %v745_v20 = vsub.f32 %v673_v26, %v122_v52  ;;  %v108_v25 = vadd.f32 %v107_v62, %v106_v48  ;;  %v147_v4 = vmul.f32 %v732_v63, %v732_v63 }
  0x39   :  { %v143_v18 = vmul.f32 %v720_v55, %v720_v55  ;;  %v144_v19 = vmul.f32 %v723_v56, %v723_v56  ;;  %v145_v1 = vmul.f32 %v726_v57, %v726_v57  ;;  %v146_v21 = vmul.f32 %v729_v58, %v729_v58 }
  0x3a   :  { %v148_v5 = vmul.f32 %v735_v0, %v735_v0  ;;  %v149_v26 = vmul.f32 %v738_v17, %v738_v17  ;;  %v150_v8 = vmul.f32 %v745_v20, %v745_v20  ;;  %v764_v11 = vsub.f32 %v687_v37, %v124_v22 }
  0x3b   :  { %v159_v6 = vsel %vm45_vm0, %v143_v18, 0.0  ;;  %v160_v7 = vsel %vm45_vm0, %v144_v19, 0.0  ;;  %v168_v9 = vsel %vm45_vm0, %v145_v1, 0.0  ;;  %v169_v10 = vsel %vm45_vm0, %v146_v21, 0.0 }
  0x3c   :  { %v767_v12 = vsub.f32 %v689_v38, %v124_v22  ;;  %v125_v16 = vmul.f32 0.0625, %v108_v25  ;;  %v177_v23 = vsel %vm45_vm0, %v147_v4, 0.0  ;;  %v178_v24 = vsel %vm45_vm0, %v148_v5, 0.0 }
  0x3d   :  { %v161_v27 = vadd.f32 %v160_v7, %v159_v6  ;;  %v186_v28 = vsel %vm45_vm0, %v149_v26, 0.0  ;;  %v187_v37 = vsel %vm45_vm0, %v150_v8, 0.0  ;;  %v170_v29 = vadd.f32 %v169_v10, %v168_v9 }
  0x3e   :  { %v153_v38 = vmul.f32 %v764_v11, %v764_v11  ;;  %v154_v41 = vmul.f32 %v767_v12, %v767_v12  ;;  %v151_v31 = vmul.f32 %v770_v14, %v770_v14  ;;  %v152_v32 = vmul.f32 %v773_v15, %v773_v15 }
  0x3f   :  { %v794_v33 = vsub.f32 %v707_v53, %v125_v16  ;;  %v797_v34 = vsub.f32 %v709_v54, %v125_v16  ;;  %v179_v35 = vadd.f32 %v178_v24, %v177_v23  ;;  %v162_v36 = vrot.slane %v161_v27, 4 }
  0x40   :  { %v188_v39 = vadd.f32 %v187_v37, %v186_v28  ;;  %v171_v49 = vrot.slane %v170_v29, 4  ;;  %v204_v40 = vsel %vm45_vm0, %v153_v38, 0.0  ;;  %v205_v50 = vsel %vm45_vm0, %v154_v41, 0.0 }
  0x41   :  { %v157_v43 = vmul.f32 %v784_v42, %v784_v42  ;;  %v158_v44 = vmul.f32 %v787_v30, %v787_v30  ;;  %v195_v53 = vsel %vm45_vm0, %v151_v31, 0.0  ;;  %v196_v45 = vsel %vm45_vm0, %v152_v32, 0.0 }
  0x42   :  { %v155_v54 = vmul.f32 %v794_v33, %v794_v33  ;;  %v156_v46 = vmul.f32 %v797_v34, %v797_v34  ;;  %v180_v47 = vrot.slane %v179_v35, 4  ;;  %v163_v48 = vadd.f32 %v162_v36, %v161_v27 }
  0x43   :  { %v189_v51 = vrot.slane %v188_v39, 4  ;;  %v206_v52 = vadd.f32 %v205_v50, %v204_v40  ;;  %v172_v59 = vadd.f32 %v171_v49, %v170_v29  ;;  %v197_v60 = vadd.f32 %v196_v45, %v195_v53 }
  0x44   :  { %v222_v61 = vsel %vm45_vm0, %v157_v43, 0.0  ;;  %v223_v62 = vsel %vm45_vm0, %v158_v44, 0.0  ;;  %v213_v18 = vsel %vm45_vm0, %v155_v54, 0.0  ;;  %v214_v19 = vsel %vm45_vm0, %v156_v46, 0.0 }
  0x45   :  { %v181_v1 = vadd.f32 %v180_v47, %v179_v35  ;;  %v164_v21 = vrot.slane %v163_v48, 2  ;;  %v190_v22 = vadd.f32 %v189_v51, %v188_v39  ;;  %v207_v2 = vrot.slane %v206_v52, 4 }
  0x46   :  { %v224_v3 = vadd.f32 %v223_v62, %v222_v61  ;;  %v173_v25 = vrot.slane %v172_v59, 2  ;;  %v198_v4 = vrot.slane %v197_v60, 4  ;;  %v215_v5 = vadd.f32 %v214_v19, %v213_v18 }
  0x47   :  { %v182_v26 = vrot.slane %v181_v1, 2  ;;  %v165_v6 = vadd.f32 %v164_v21, %v163_v48  ;;  %v191_v7 = vrot.slane %v190_v22, 2  ;;  %v208_v8 = vadd.f32 %v207_v2, %v206_v52 }
  0x48   :  { %v225_v9 = vrot.slane %v224_v3, 4  ;;  %v174_v10 = vadd.f32 %v173_v25, %v172_v59  ;;  %v199_v13 = vadd.f32 %v198_v4, %v197_v60  ;;  %v216_v16 = vrot.slane %v215_v5, 4 }
  0x49   :  { %v183_v23 = vadd.f32 %v182_v26, %v181_v1  ;;  %v166_v24 = vrot.slane %v165_v6, 1  ;;  %v192_v27 = vadd.f32 %v191_v7, %v190_v22  ;;  %v209_v28 = vrot.slane %v208_v8, 2 }
  0x4a   :  { %v226_v37 = vadd.f32 %v225_v9, %v224_v3  ;;  %v175_v29 = vrot.slane %v174_v10, 1  ;;  %v200_v38 = vrot.slane %v199_v13, 2  ;;  %v217_v41 = vadd.f32 %v216_v16, %v215_v5 }
  0x4b   :  { %v184_v31 = vrot.slane %v183_v23, 1  ;;  %v167_v32 = vadd.f32 %v166_v24, %v165_v6  ;;  %v193_v35 = vrot.slane %v192_v27, 1  ;;  %v210_v36 = vadd.f32 %v209_v28, %v208_v8 }
  0x4c   :  { %v227_v39 = vrot.slane %v226_v37, 2  ;;  %v176_v49 = vadd.f32 %v175_v29, %v174_v10  ;;  %v201_v40 = vadd.f32 %v200_v38, %v199_v13  ;;  %v218_v50 = vrot.slane %v217_v41, 2 }
  0x4d   :  { %v185_v43 = vadd.f32 %v184_v31, %v183_v23  ;;  %v231_v44 = vmul.f32 0.06666667, %v167_v32  ;;  %v194_v53 = vadd.f32 %v193_v35, %v192_v27  ;;  %v211_v45 = vrot.slane %v210_v36, 1 }
  0x4e   :  { %v228_v54 = vadd.f32 %v227_v39, %v226_v37  ;;  %v232_v46 = vmul.f32 0.06666667, %v176_v49  ;;  %v202_v47 = vrot.slane %v201_v40, 1  ;;  %v219_v48 = vadd.f32 %v218_v50, %v217_v41 }
  0x4f   :  { %v233_v51 = vmul.f32 0.06666667, %v185_v43  ;;  %v239_v52 = vadd.f32 1e-05, %v231_v44  ;;  %v234_v59 = vmul.f32 0.06666667, %v194_v53  ;;  %v212_v60 = vadd.f32 %v211_v45, %v210_v36 }
  0x50   :  { %v229_v61 = vrot.slane %v228_v54, 1  ;;  %v268_v62 = vlaneseq  ;;  %v240_v18 = vadd.f32 1e-05, %v232_v46  ;;  %v203_v19 = vadd.f32 %v202_v47, %v201_v40 }
  0x51   :  { %v220_v1 = vrot.slane %v219_v48, 1  ;;  %v241_v21 = vadd.f32 1e-05, %v233_v51  ;;  %503 = vrsqrt.f32 %v239_v52  ;;  %v242_v22 = vadd.f32 1e-05, %v234_v59 }
  0x52   :  { %v236_v2 = vmul.f32 0.06666667, %v212_v60  ;;  %v230_v3 = vadd.f32 %v229_v61, %v228_v54  ;;  %v269_v25 = vshrl.u32 %v268_v62, 7  ;;  %505 = vrsqrt.f32 %v240_v18 }
  0x53   :  { %v235_v4 = vmul.f32 0.06666667, %v203_v19  ;;  %v221_v5 = vadd.f32 %v220_v1, %v219_v48  ;;  %507 = vrsqrt.f32 %v241_v21 }
  0x54   :  { %509 = vrsqrt.f32 %v242_v22  ;;  %v244_v7 = vadd.f32 1e-05, %v236_v2  ;;  %v238_v8 = vmul.f32 0.06666667, %v230_v3  ;;  %v815_v9 = vsub.s32 0, %v269_v25 }
  0x55   :  { %v243_v10 = vadd.f32 1e-05, %v235_v4  ;;  %v237_v13 = vmul.f32 0.06666667, %v221_v5 }
  0x56   :  { %511 = vrsqrt.f32 %v244_v7  ;;  %v246_v24 = vadd.f32 1e-05, %v238_v8 }
  0x57   :  { %513 = vrsqrt.f32 %v243_v10  ;;  %v245_v28 = vadd.f32 1e-05, %v237_v13 }
  0x58   :  { %515 = vrsqrt.f32 %v246_v24 }
  0x59   :  { %517 = vrsqrt.f32 %v245_v28 }
  0x5b   :  { %v504_v37 = vpop.eup %503 }
  0x5c   :  { %v506_v38 = vpop.eup %505 }
  0x5d   :  { %v508_v32 = vpop.eup %507 }
  0x5e   :  { %v510_v49 = vpop.eup %509 }
  0x60   :  { %v512_v46 = vpop.eup %511 }
  0x61   :  { %v514_v59 = vpop.eup %513 }
  0x62   :  { %v516_v3 = vpop.eup %515 }
  0x63   :  { %v518_v25 = vpop.eup %517 }
  0x94   :  { %v284_v26 = vpop.permute.xlu1 %283  ;;  %v266_v6 = vpop.permute.xlu0 %265 }
  0x95   :  { %v271_v27 = vrot.slane %v266_v6, %v815_v9  ;;  %v289_v35 = vrot.slane %v284_v26, %v815_v9 }
  0x97   :  { %v335_v36 = vmul.f32 %v504_v37, %v271_v27  ;;  %v337_v44 = vmul.f32 %v508_v32, %v289_v35 }
  0x98   :  { %v293_v16 = vpop.permute.xlu1 %292  ;;  %v275_v23 = vpop.permute.xlu0 %274 }
  0x99   :  { %v280_v29 = vrot.slane %v275_v23, %v815_v9  ;;  %v298_v39 = vrot.slane %v293_v16, %v815_v9  ;;  %v351_v54 = vmul.f32 %v335_v36, %v720_v55  ;;  %v352_v52 = vmul.f32 %v335_v36, %v723_v56 }
  0x9a   :  { %v355_v55 = vmul.f32 %v337_v44, %v732_v63  ;;  %v356_v2 = vmul.f32 %v337_v44, %v735_v0 }
  0x9b   :  { %v336_v40 = vmul.f32 %v506_v38, %v280_v29  ;;  %v338_v53 = vmul.f32 %v510_v49, %v298_v39 }
  0x9c   :  { %v311_v41 = vpop.permute.xlu1 %310  ;;  %v302_v31 = vpop.permute.xlu0 %301 }
  0x9d   :  { %v316_v45 = vrot.slane %v311_v41, %v815_v9  ;;  %v307_v47 = vrot.slane %v302_v31, %v815_v9  ;;  %v353_v48 = vmul.f32 %v336_v40, %v726_v57  ;;  %v354_v51 = vmul.f32 %v336_v40, %v729_v58 }
  0x9e   :  { %v357_v22 = vmul.f32 %v338_v53, %v738_v17  ;;  %v358_v17 = vmul.f32 %v338_v53, %v745_v20 }
  0x9f   :  { %v340_v21 = vmul.f32 %v512_v46, %v316_v45  ;;  %v339_v57 = vmul.f32 %v514_v59, %v307_v47 }
  0xa0   :  { %v329_v50 = vpop.permute.xlu1 %328  ;;  %v320_v43 = vpop.permute.xlu0 %319 }
  0xa1   :  { %v334_v58 = vrot.slane %v329_v50, %v815_v9  ;;  %v325_v56 = vrot.slane %v320_v43, %v815_v9  ;;  %v361_v7 = vmul.f32 %v340_v21, %v764_v11  ;;  %v362_v8 = vmul.f32 %v340_v21, %v767_v12 }
  0xa2   :  { %v359_v20 = vmul.f32 %v339_v57, %v770_v14  ;;  %v360_v13 = vmul.f32 %v339_v57, %v773_v15 }
  0xa3   :  { %v342_v9 = vmul.f32 %v516_v3, %v334_v58  ;;  %v341_v10 = vmul.f32 %v518_v25, %v325_v56 }
  0xa4   :  { %v413_v60 = vpop.permute.xlu1 %412  ;;  %v409_v61 = vpop.permute.xlu0 %408 }
  0xa5   :  { %v441_v62 = vadd.f32 %v413_v60, %v353_v48  ;;  %v442_v18 = vadd.f32 %v413_v60, %v354_v51  ;;  %v439_v19 = vadd.f32 %v409_v61, %v351_v54  ;;  %v440_v1 = vadd.f32 %v409_v61, %v352_v52 }
  0xa6   :  { %v365_v14 = vmul.f32 %v342_v9, %v784_v42  ;;  %v366_v15 = vmul.f32 %v342_v9, %v787_v30  ;;  %v363_v28 = vmul.f32 %v341_v10, %v794_v33  ;;  %v364_v37 = vmul.f32 %v341_v10, %v797_v34 }
  0xa7   :  { %457 = vst.msk [vmem:[#allocation5 + $0x10] sm:$0xff] %vm45_vm0, %v441_v62  ;;  %458 = vst.msk [vmem:[#allocation5 + $0x18] sm:$0xff] %vm45_vm0, %v442_v18 }
  0xa8   :  { %455 = vst.msk [vmem:[#allocation5] sm:$0xff] %vm45_vm0, %v439_v19  ;;  %456 = vst.msk [vmem:[#allocation5 + $0x8] sm:$0xff] %vm45_vm0, %v440_v1  ;;  %v421_v63 = vpop.permute.xlu1 %420  ;;  %v417_v4 = vpop.permute.xlu0 %416 }
  0xa9   :  { %v445_v0 = vadd.f32 %v421_v63, %v357_v22  ;;  %v446_v5 = vadd.f32 %v421_v63, %v358_v17  ;;  %v443_v26 = vadd.f32 %v417_v4, %v355_v55  ;;  %v444_v6 = vadd.f32 %v417_v4, %v356_v2 }
  0xab   :  { %461 = vst.msk [vmem:[#allocation5 + $0x30] sm:$0xff] %vm45_vm0, %v445_v0  ;;  %462 = vst.msk [vmem:[#allocation5 + $0x38] sm:$0xff] %vm45_vm0, %v446_v5 }
  0xac   :  { %459 = vst.msk [vmem:[#allocation5 + $0x20] sm:$0xff] %vm45_vm0, %v443_v26  ;;  %460 = vst.msk [vmem:[#allocation5 + $0x28] sm:$0xff] %vm45_vm0, %v444_v6  ;;  %v429_v16 = vpop.permute.xlu1 %428  ;;  %v425_v23 = vpop.permute.xlu0 %424 }
  0xad   :  { %v449_v24 = vadd.f32 %v429_v16, %v361_v7  ;;  %v450_v11 = vadd.f32 %v429_v16, %v362_v8  ;;  %v447_v27 = vadd.f32 %v425_v23, %v359_v20  ;;  %v448_v12 = vadd.f32 %v425_v23, %v360_v13 }
  0xaf   :  { %465 = vst.msk [vmem:[#allocation5 + $0x50] sm:$0xff] %vm45_vm0, %v449_v24  ;;  %466 = vst.msk [vmem:[#allocation5 + $0x58] sm:$0xff] %vm45_vm0, %v450_v11 }
  0xb0   :  { %463 = vst.msk [vmem:[#allocation5 + $0x40] sm:$0xff] %vm45_vm0, %v447_v27  ;;  %464 = vst.msk [vmem:[#allocation5 + $0x48] sm:$0xff] %vm45_vm0, %v448_v12  ;;  %v437_v29 = vpop.permute.xlu1 %436  ;;  %v433_v38 = vpop.permute.xlu0 %432 }
  0xb1   :  { %v453_v41 = vadd.f32 %v437_v29, %v365_v14  ;;  %v454_v31 = vadd.f32 %v437_v29, %v366_v15  ;;  %v451_v32 = vadd.f32 %v433_v38, %v363_v28  ;;  %v452_v35 = vadd.f32 %v433_v38, %v364_v37 }
  0xb3   :  { %469 = vst.msk [vmem:[#allocation5 + $0x70] sm:$0xff] %vm45_vm0, %v453_v41  ;;  %470 = vst.msk [vmem:[#allocation5 + $0x78] sm:$0xff] %vm45_vm0, %v454_v31 }
  0xb4   :  { %467 = vst.msk [vmem:[#allocation5 + $0x60] sm:$0xff] %vm45_vm0, %v451_v32  ;;  %468 = vst.msk [vmem:[#allocation5 + $0x68] sm:$0xff] %vm45_vm0, %v452_v35 }
  0xb5   :  { %552 = shalt.err (!%p549_p12)
}
  0xb6   :  { %s553_s7 = scalar_lea.hbm %s875_s3, 2048 }
  0xb7   :  { %p554_p13 = scmp.ne.s32.totalorder %s875_s3, %s553_s7  ;;  %p557_p0 = scmp.lt.u32.totalorder %s553_s7, %s875_s3 }
  0xb9   :  { %p559_p1 = pnand %p557_p0, %p554_p13 }
  0xbb   :  { %562 = shalt.err (!%p559_p1)
}
  0xbc   :  { %482 = dma.vmem_to_hbm [thread:$0]  %s477_s4, 2048, %s875_s3, [#allocation4], %s568_s22, %s568_s22, %s569_s23  }
  0xbd   :  { %565 = dma.done.wait [#allocation4], 2048  }
  0xbe   :  { %566 = vsyncadd [#allocation4], 4294965248 }
  0xbf   :  { %486 = vsyncpa [#allocation3], 1 }
  0xc0   :  { %487 = vsyncpa [#allocation4], 1 }

</bundles_post_ra>
